<compile_context>
chip_gen: v7x
topology: tpu7x:2x2x1
jax: 0.10.0
libtpu: 0.0.40
codegen_flags: <defaults>
</compile_context>

<pallas_src>
import functools

import jax
import jax.numpy as jnp
from jax.experimental import pallas as pl
from jax.experimental.pallas import tpu as pltpu


def _attention_kernel(enc_ref, hid_ref, w1e_ref, w1h_ref, b1_ref, w2_ref,
                      ctx_ref, *, b_tile, seq, seq_blk, dim):
    # enc_ref: (b_tile, seq_blk, D)  encoder outputs (seq zero-padded iff S%8!=0)
    # hid_ref: (b_tile, 1, D)        decoder hidden state
    # w1e_ref: (D, D) = W1[:, :D].T  (encoder half of the concat, pre-transposed)
    # w1h_ref: (D, D) = W1[:, D:].T  (hidden half)
    # b1_ref : (1, D)
    # w2_ref : (1, D)
    # ctx_ref: (b_tile, 1, D)        output context
    enc = enc_ref[...]
    hid = hid_ref[...][:, 0, :]                           # (b_tile, D)

    # linear1 over the algebraically split concat:
    #   linear1(cat(enc, hid)) = enc @ W1[:, :D].T + hid @ W1[:, D:].T + b1
    # The encoder term is fused across (batch, seq) into ONE MXU matmul.
    h_enc = jnp.dot(enc.reshape(b_tile * seq_blk, dim), w1e_ref[...],
                    preferred_element_type=jnp.float32)
    h_hid = jnp.dot(hid, w1h_ref[...],
                    preferred_element_type=jnp.float32) + b1_ref[...]
    h = jnp.tanh(h_enc.reshape(b_tile, seq_blk, dim) + h_hid[:, None, :])

    # Attention logits (b_tile, seq_blk): VPU multiply + lane reduce (an MXU dot
    # with N=1 would waste a full pass at <1% utilization).
    e = jnp.sum(h * w2_ref[...][None, :, :], axis=-1)

    if seq_blk > seq:  # static branch: mask zero-padded sequence positions
        pos = jax.lax.broadcasted_iota(jnp.int32, (b_tile, seq_blk), 1)
        e = jnp.where(pos < seq, e, -jnp.inf)

    # Softmax over the sequence axis (exact divide keeps 1e-5 parity with ref;
    # the denominator is only (b_tile, 1) so the EUP approx buys nothing).
    m = jnp.max(e, axis=-1, keepdims=True)
    p = jnp.exp(e - m)
    alpha = p / jnp.sum(p, axis=-1, keepdims=True)

    # context = sum_s alpha[b, s] * enc[b, s] -- VPU weighted reduce over S
    # (trivial FLOPs; avoids b_tile separate M=1 MXU passes + MRF pops).
    ctx = jnp.sum(alpha[:, :, None] * enc, axis=1)        # (b_tile, D)
    ctx_ref[...] = ctx[:, None, :].astype(ctx_ref.dtype)


def _round_up(x, m):
    return (x + m - 1) // m * m


def _vmem_budget():
    """Returns (vmem_limit_bytes, enc_block_budget_bytes) per TPU generation."""
    cap = None
    try:
        cap = getattr(pltpu.get_tpu_info(), "vmem_capacity_bytes", None)
    except Exception:
        cap = None
    if not cap:
        cap = 64 * 1024 * 1024                      # conservative default (v7x)
    vmem_limit = int(min(max(cap - 16 * 1024 * 1024, 32 * 1024 * 1024),
                         96 * 1024 * 1024))
    # enc block cap: ~4 MiB on 64 MiB-VMEM chips (v7x), ~8 MiB on 128 MiB chips
    # (v5e/v6e).  Peak VMEM ~= 2x double-buffered enc block + ~4 same-size f32
    # intermediates + tiny shared weights, so this stays well inside the limit.
    enc_block_budget = (4 * 1024 * 1024 if cap <= 64 * 1024 * 1024
                        else 8 * 1024 * 1024)
    return vmem_limit, enc_block_budget


def attention(hidden_state, encoder_outputs, w1, b1, w2):
    """hidden_state: (B, 1, D) or (B, D); encoder_outputs: (B, S, D).

    Returns the context of shape (B, D), matching the PyTorch module."""
    B, S, D = encoder_outputs.shape
    f32 = jnp.float32

    enc = encoder_outputs.astype(f32)
    hid = hidden_state.reshape(B, 1, D).astype(f32)
    w1 = jnp.asarray(w1, f32)
    w1e = jnp.transpose(w1[:, :D])                  # (D, D) encoder half of concat
    w1h = jnp.transpose(w1[:, D:])                  # (D, D) hidden  half of concat
    b1_2d = jnp.asarray(b1, f32).reshape(1, D)
    w2_2d = jnp.asarray(w2, f32).reshape(1, D)

    # Only the seq axis is ever padded (to a sublane multiple of 8, and only
    # when needed).  D stays unpadded: lane padding happens inside VMEM for
    # free, while padding it in HBM was the old version's dominant cost.
    s_blk = _round_up(S, 8)
    if s_blk != S:
        enc = jnp.pad(enc, ((0, 0), (0, s_blk - S), (0, 0)))

    # Batch tile: largest tile whose enc block fits the per-generation VMEM
    # budget (VMEM footprint counts lanes rounded to 128 due to (8,128) tiling,
    # even though HBM traffic is unpadded).
    vmem_limit, enc_block_budget = _vmem_budget()
    bytes_per_batch = s_blk * _round_up(D, 128) * 4
    b_tile = int(min(B, max(1, enc_block_budget // bytes_per_batch)))
    grid = pl.cdiv(B, b_tile)
    # TODO(synk): for very large S*D (one batch element exceeding the block
    # budget) add a seq-tiling "arbitrary" grid axis with online-softmax
    # accumulation instead of loading a whole (1, S, D) slab.

    kernel = functools.partial(_attention_kernel, b_tile=b_tile, seq=S,
                               seq_blk=s_blk, dim=D)

    out = pl.pallas_call(
        kernel,
        out_shape=jax.ShapeDtypeStruct((B, 1, D), f32),
        grid=(grid,),
        in_specs=[
            pl.BlockSpec((b_tile, s_blk, D), lambda i: (i, 0, 0)),  # enc (streamed, unpadded D)
            pl.BlockSpec((b_tile, 1, D), lambda i: (i, 0, 0)),      # hid
            pl.BlockSpec((D, D), lambda i: (0, 0)),                 # W1 enc half (shared)
            pl.BlockSpec((D, D), lambda i: (0, 0)),                 # W1 hid half (shared)
            pl.BlockSpec((1, D), lambda i: (0, 0)),                 # b1 (shared)
            pl.BlockSpec((1, D), lambda i: (0, 0)),                 # w2 (shared)
        ],
        out_specs=pl.BlockSpec((b_tile, 1, D), lambda i: (i, 0, 0)),
        compiler_params=pltpu.CompilerParams(
            dimension_semantics=("parallel",),
            vmem_limit_bytes=vmem_limit,
        ),
    )(enc, hid, w1e, w1h, b1_2d, w2_2d)

    return out.reshape(B, D)


def _reference(hidden_state, encoder_outputs, w1, b1, w2):
    """Pure-JAX reference that mirrors the PyTorch forward exactly."""
    B, S, D = encoder_outputs.shape
    hid = jnp.broadcast_to(hidden_state.reshape(B, 1, D), (B, S, D))
    inputs = jnp.concatenate([encoder_outputs, hid], axis=2).reshape(-1, 2 * D)
    o = jnp.tanh(inputs @ w1.T + b1) @ w2.T            # (B*S, 1)
    e = o.reshape(B, S)
    alpha = jax.nn.softmax(e, axis=1)
    return jnp.einsum("bs,bsd->bd", alpha, encoder_outputs)


if __name__ == "__main__":
    B, S, D = 2, 8, 32
    key = jax.random.PRNGKey(0)
    k_enc, k_hid, k_w1, k_b1, k_w2 = jax.random.split(key, 5)

    encoder_outputs = jax.random.normal(k_enc, (B, S, D), jnp.float32)
    hidden_state = jax.random.normal(k_hid, (B, 1, D), jnp.float32)

    # Deterministic xavier-normal-style init for linear1 (D, 2D) and linear2 (1, D).
    w1 = jax.random.normal(k_w1, (D, 2 * D), jnp.float32) * (2.0 / (D + 2 * D)) ** 0.5
    b1 = jax.random.normal(k_b1, (D,), jnp.float32) * 0.01
    w2 = jax.random.normal(k_w2, (1, D), jnp.float32) * (2.0 / (1 + D)) ** 0.5

    ctx = attention(hidden_state, encoder_outputs, w1, b1, w2)
    jax.block_until_ready(ctx)

    ref = _reference(hidden_state, encoder_outputs, w1, b1, w2)
    assert ctx.shape == (B, D)
    assert jnp.allclose(ctx, ref, atol=1e-5, rtol=1e-5), "mismatch vs reference"

    print("KERNEL_OK")
</pallas_src>

<mosaic_0001>
module attributes {stable_mosaic.version = 11 : i64} {
  func.func @_attention_kernel(%arg0: i32, %arg1: memref<2x8x32xf32, #tpu.memory_space<vmem>>, %arg2: memref<2x1x32xf32, #tpu.memory_space<vmem>>, %arg3: memref<32x32xf32, #tpu.memory_space<vmem>>, %arg4: memref<32x32xf32, #tpu.memory_space<vmem>>, %arg5: memref<1x32xf32, #tpu.memory_space<vmem>>, %arg6: memref<1x32xf32, #tpu.memory_space<vmem>>, %arg7: memref<2x1x32xf32, #tpu.memory_space<vmem>>) attributes {dimension_semantics = [#tpu.dimension_semantics<parallel>], iteration_bounds = array<i64: 1>, scalar_prefetch = 0 : i64, scratch_operands = 0 : i64, tpu.core_type = #tpu.core_type<tc>, window_params = [{transform_indices = @transform_0, window_bounds = array<i64: 2, 8, 32>}, {transform_indices = @transform_1, window_bounds = array<i64: 2, 1, 32>}, {pipeline_mode = #tpu.pipeline_mode<synchronous>, transform_indices = @transform_2, window_bounds = array<i64: 32, 32>}, {pipeline_mode = #tpu.pipeline_mode<synchronous>, transform_indices = @transform_3, window_bounds = array<i64: 32, 32>}, {pipeline_mode = #tpu.pipeline_mode<synchronous>, transform_indices = @transform_4, window_bounds = array<i64: 1, 32>}, {pipeline_mode = #tpu.pipeline_mode<synchronous>, transform_indices = @transform_5, window_bounds = array<i64: 1, 32>}, {transform_indices = @transform_6, window_bounds = array<i64: 2, 1, 32>}]} {
    %c0 = arith.constant 0 : index
    %c0_0 = arith.constant 0 : index
    %c0_1 = arith.constant 0 : index
    %0 = vector.load %arg1[%c0, %c0_0, %c0_1] : memref<2x8x32xf32, #tpu.memory_space<vmem>>, vector<2x8x32xf32>
    %c0_2 = arith.constant 0 : index
    %c0_3 = arith.constant 0 : index
    %c0_4 = arith.constant 0 : index
    %1 = vector.load %arg2[%c0_2, %c0_3, %c0_4] : memref<2x1x32xf32, #tpu.memory_space<vmem>>, vector<2x1x32xf32>
    %2 = vector.shape_cast %1 : vector<2x1x32xf32> to vector<2x32xf32>
    %3 = vector.shape_cast %0 : vector<2x8x32xf32> to vector<16x32xf32>
    %c0_5 = arith.constant 0 : index
    %c0_6 = arith.constant 0 : index
    %4 = vector.load %arg3[%c0_5, %c0_6] : memref<32x32xf32, #tpu.memory_space<vmem>>, vector<32x32xf32>
    %cst = arith.constant dense<0.000000e+00> : vector<16x32xf32>
    %5 = tpu.matmul %3, %4, %cst {dimension_numbers = #tpu.dot_dimension_numbers<[1], [0], [0], [1], [0, 0, 1, 1], [], []>} : vector<16x32xf32>, vector<32x32xf32>, vector<16x32xf32> -> vector<16x32xf32>
    %c0_7 = arith.constant 0 : index
    %c0_8 = arith.constant 0 : index
    %6 = vector.load %arg4[%c0_7, %c0_8] : memref<32x32xf32, #tpu.memory_space<vmem>>, vector<32x32xf32>
    %cst_9 = arith.constant dense<0.000000e+00> : vector<2x32xf32>
    %7 = tpu.matmul %2, %6, %cst_9 {dimension_numbers = #tpu.dot_dimension_numbers<[1], [0], [0], [1], [0, 0, 1, 1], [], []>} : vector<2x32xf32>, vector<32x32xf32>, vector<2x32xf32> -> vector<2x32xf32>
    %c0_10 = arith.constant 0 : index
    %c0_11 = arith.constant 0 : index
    %8 = vector.load %arg5[%c0_10, %c0_11] : memref<1x32xf32, #tpu.memory_space<vmem>>, vector<1x32xf32>
    %9 = vector.broadcast %8 : vector<1x32xf32> to vector<2x32xf32>
    %10 = arith.addf %7, %9 : vector<2x32xf32>
    %11 = vector.shape_cast %5 : vector<16x32xf32> to vector<2x8x32xf32>
    %12 = vector.shape_cast %10 : vector<2x32xf32> to vector<2x1x32xf32>
    %13 = vector.broadcast %12 : vector<2x1x32xf32> to vector<2x8x32xf32>
    %14 = arith.addf %11, %13 : vector<2x8x32xf32>
    %15 = math.tanh %14 : vector<2x8x32xf32>
    %c0_12 = arith.constant 0 : index
    %c0_13 = arith.constant 0 : index
    %16 = vector.load %arg6[%c0_12, %c0_13] : memref<1x32xf32, #tpu.memory_space<vmem>>, vector<1x32xf32>
    %17 = vector.shape_cast %16 : vector<1x32xf32> to vector<1x1x32xf32>
    %18 = vector.broadcast %17 : vector<1x1x32xf32> to vector<2x8x32xf32>
    %19 = arith.mulf %15, %18 : vector<2x8x32xf32>
    %cst_14 = arith.constant dense<0.000000e+00> : vector<2x8xf32>
    %20 = vector.multi_reduction <add>, %19, %cst_14 [2] : vector<2x8x32xf32> to vector<2x8xf32>
    %cst_15 = arith.constant dense<0xFF800000> : vector<2xf32>
    %21 = vector.multi_reduction <maximumf>, %20, %cst_15 [1] : vector<2x8xf32> to vector<2xf32>
    %22 = vector.shape_cast %21 : vector<2xf32> to vector<2x1xf32>
    %23 = vector.broadcast %22 : vector<2x1xf32> to vector<2x8xf32>
    %24 = arith.subf %20, %23 : vector<2x8xf32>
    %25 = math.exp %24 : vector<2x8xf32>
    %cst_16 = arith.constant dense<0.000000e+00> : vector<2xf32>
    %26 = vector.multi_reduction <add>, %25, %cst_16 [1] : vector<2x8xf32> to vector<2xf32>
    %27 = vector.shape_cast %26 : vector<2xf32> to vector<2x1xf32>
    %28 = vector.broadcast %27 : vector<2x1xf32> to vector<2x8xf32>
    %29 = arith.divf %25, %28 : vector<2x8xf32>
    %30 = vector.shape_cast %29 : vector<2x8xf32> to vector<2x8x1xf32>
    %31 = vector.broadcast %30 : vector<2x8x1xf32> to vector<2x8x32xf32>
    %32 = arith.mulf %31, %0 : vector<2x8x32xf32>
    %cst_17 = arith.constant dense<0.000000e+00> : vector<2x32xf32>
    %33 = vector.multi_reduction <add>, %32, %cst_17 [1] : vector<2x8x32xf32> to vector<2x32xf32>
    %34 = vector.shape_cast %33 : vector<2x32xf32> to vector<2x1x32xf32>
    %c0_18 = arith.constant 0 : index
    %c0_19 = arith.constant 0 : index
    %c0_20 = arith.constant 0 : index
    %35 = vector.load %arg7[%c0_18, %c0_19, %c0_20] : memref<2x1x32xf32, #tpu.memory_space<vmem>>, vector<2x1x32xf32>
    tpu.vector_store %arg7[%c0_18, %c0_19, %c0_20], %34 {strides = array<i32>} : memref<2x1x32xf32, #tpu.memory_space<vmem>>, vector<2x1x32xf32>,
    return
  }
  func.func @transform_0(%arg0: i32) -> (i32, i32, i32) {
    %c0_i32 = arith.constant 0 : i32
    %c0_i32_0 = arith.constant 0 : i32
    %c0_i32_1 = arith.constant 0 : i32
    return %arg0, %c0_i32, %c0_i32_0 : i32, i32, i32
  }
  func.func @transform_1(%arg0: i32) -> (i32, i32, i32) {
    %c0_i32 = arith.constant 0 : i32
    %c0_i32_0 = arith.constant 0 : i32
    %c0_i32_1 = arith.constant 0 : i32
    return %arg0, %c0_i32, %c0_i32_0 : i32, i32, i32
  }
  func.func @transform_2(%arg0: i32) -> (i32, i32) {
    %c0_i32 = arith.constant 0 : i32
    %c0_i32_0 = arith.constant 0 : i32
    %c0_i32_1 = arith.constant 0 : i32
    return %c0_i32, %c0_i32_0 : i32, i32
  }
  func.func @transform_3(%arg0: i32) -> (i32, i32) {
    %c0_i32 = arith.constant 0 : i32
    %c0_i32_0 = arith.constant 0 : i32
    %c0_i32_1 = arith.constant 0 : i32
    return %c0_i32, %c0_i32_0 : i32, i32
  }
  func.func @transform_4(%arg0: i32) -> (i32, i32) {
    %c0_i32 = arith.constant 0 : i32
    %c0_i32_0 = arith.constant 0 : i32
    %c0_i32_1 = arith.constant 0 : i32
    return %c0_i32, %c0_i32_0 : i32, i32
  }
  func.func @transform_5(%arg0: i32) -> (i32, i32) {
    %c0_i32 = arith.constant 0 : i32
    %c0_i32_0 = arith.constant 0 : i32
    %c0_i32_1 = arith.constant 0 : i32
    return %c0_i32, %c0_i32_0 : i32, i32
  }
  func.func @transform_6(%arg0: i32) -> (i32, i32, i32) {
    %c0_i32 = arith.constant 0 : i32
    %c0_i32_0 = arith.constant 0 : i32
    %c0_i32_1 = arith.constant 0 : i32
    return %arg0, %c0_i32, %c0_i32_0 : i32, i32, i32
  }
}

</mosaic_0001>

<bundles_post_ra>
// kernel: tpu_custom_call.1
= control target key start
LH: loop header
LB: loop body
LE: loop exit
PB: predicated region body
PF: predicated region fallthrough
CT: control target
= control target key end

     0   :  { %11 = vsyncpa [#allocation3], 0  ;;  %s748_s0 = inlined_call_operand.hbm [shape: f32[2,8,32], index: 0, kind: input, shape index: {}]   ;;  %s749_s1 = inlined_call_operand.vmem [shape: f32[2,1,32], index: 1, kind: input, shape index: {}]   ;;  %s750_s2 = inlined_call_operand.hbm [shape: f32[32,32], index: 2, kind: input, shape index: {}]   ;;  %s751_s3 = inlined_call_operand.hbm [shape: f32[32,32], index: 3, kind: input, shape index: {}]   ;;  %s752_s4 = inlined_call_operand.vmem [shape: f32[1,32], index: 4, kind: input, shape index: {}]   ;;  %s753_s5 = inlined_call_operand.vmem [shape: f32[1,32], index: 5, kind: input, shape index: {}]   ;;  %s754_s6 = inlined_call_operand.hbm [shape: f32[2,1,32], index: 6, kind: output, shape index: {}]  }
   0x1   :  { %12 = vsyncpa [#allocation6], 0 }
   0x2   :  { %13 = vsyncpa [#allocation4], 0  ;;  %s599_s21 = smov [#allocation5]   ;;  %s600_s23 = smov [#allocation2]  }
   0x3   :  { %s33_s22 = sshll.u32 %s599_s21, 4  ;;  %s19_s24 = sshll.u32 %s600_s23, 4  ;;  %s34_s22 = int_to_ptr.vmem [resolvable:$true] %s33_s22  ;;  %s647_s24 = int_to_ptr.vmem [resolvable:$true] %s19_s24 }
   0x4   :  { %s505_s27 = scalar_lea.hbm %s750_s2, 512 }
   0x5   :  { %p506_p0 = scmp.ne.s32.totalorder %s750_s2, %s505_s27  ;;  %p509_p1 = scmp.lt.u32.totalorder %s505_s27, %s750_s2 }
   0x7   :  { %p511_p2 = pnand %p509_p1, %p506_p0 }
   0x9   :  { %514 = shalt.err (!%p511_p2)
}
   0xa   :  { %s515_s8 = scalar_lea.vmem %s34_s22, 512  ;;  %p520_p4 = scmp.lt.s32.totalorder %s34_s22, %s34_s22 }
   0xb   :  { %p516_p3 = scmp.ne.s32.totalorder %s34_s22, %s515_s8  ;;  %p521_p5 = scmp.lt.s32.totalorder %s515_s8, %s515_s8 }
   0xd   :  { %p522_p6 = por %p521_p5, %p520_p4 }
   0xf   :  { %p523_p7 = pnand %p522_p6, %p516_p3 }
  0x11   :  { %526 = shalt.err (!%p523_p7)
}
  0x12   :  { %s601_s9 = smov 128   ;;  %s602_s10 = smov 8  }
  0x13   :  { %39 = dma.hbm_to_vmem [thread:$0]  %s750_s2, 512, %s34_s22, [#allocation6], %s601_s9, %s601_s9, %s602_s10  }
  0x14   :  { %s527_s15 = scalar_lea.hbm %s748_s0, 256 }
  0x15   :  { %p528_p8 = scmp.ne.s32.totalorder %s748_s0, %s527_s15  ;;  %p531_p9 = scmp.lt.u32.totalorder %s527_s15, %s748_s0 }
  0x17   :  { %p533_p10 = pnand %p531_p9, %p528_p8 }
  0x19   :  { %536 = shalt.err (!%p533_p10)
}
  0x1a   :  { %s537_s20 = scalar_lea.vmem %s647_s24, 256  ;;  %p542_p12 = scmp.lt.s32.totalorder %s647_s24, %s647_s24 }
  0x1b   :  { %p538_p11 = scmp.ne.s32.totalorder %s647_s24, %s537_s20  ;;  %p543_p13 = scmp.lt.s32.totalorder %s537_s20, %s537_s20 }
  0x1d   :  { %p544_p0 = por %p543_p13, %p542_p12 }
  0x1f   :  { %p545_p1 = pnand %p544_p0, %p538_p11 }
  0x21   :  { %548 = shalt.err (!%p545_p1)
}
  0x22   :  { %25 = dma.hbm_to_vmem [thread:$0]  %s748_s0, 256, %s647_s24, [#allocation3], %s601_s9, %s601_s9, %s602_s10  }
  0x23   :  { %s603_s22 = smov [#allocation7]   ;;  %s549_s27 = scalar_lea.hbm %s751_s3, 512 }
  0x24   :  { %s45_s23 = sshll.u32 %s603_s22, 4  ;;  %p550_p2 = scmp.ne.s32.totalorder %s751_s3, %s549_s27  ;;  %s46_s23 = int_to_ptr.vmem [resolvable:$true] %s45_s23 }
  0x25   :  { %p553_p3 = scmp.lt.u32.totalorder %s549_s27, %s751_s3 }
  0x27   :  { %p555_p4 = pnand %p553_p3, %p550_p2 }
  0x29   :  { %558 = shalt.err (!%p555_p4)
}
  0x2a   :  { %s559_s8 = scalar_lea.vmem %s46_s23, 512  ;;  %p564_p6 = scmp.lt.s32.totalorder %s46_s23, %s46_s23 }
  0x2b   :  { %p560_p5 = scmp.ne.s32.totalorder %s46_s23, %s559_s8  ;;  %p565_p7 = scmp.lt.s32.totalorder %s559_s8, %s559_s8 }
  0x2d   :  { %p566_p8 = por %p565_p7, %p564_p6 }
  0x2f   :  { %p567_p9 = pnand %p566_p8, %p560_p5 }
  0x31   :  { %570 = shalt.err (!%p567_p9)
}
  0x32   :  { %51 = dma.hbm_to_vmem [thread:$0]  %s751_s3, 512, %s46_s23, [#allocation6], %s601_s9, %s601_s9, %s602_s10  }
  0x33   :  { %593 = dma.done.wait [#allocation3], 256  }
  0x34   :  { %594 = vsyncadd [#allocation3], 4294967040 }
  0x35   :  { %595 = dma.done.wait [#allocation6], 1024  }
  0x36   :  { %596 = vsyncadd [#allocation6], 4294966272  ;;  %v604_v0 = vmov 0.0|0.0   ;;  %vm605_vm0 = vmmov 0   ;;  %v606_v1 = vmov 0.0   ;;  %v172_v2 = vlaneseq  ;;  %v155_v7 = vld [vmem:[#allocation7] sm:$0xff] }
  0x37   :  { %472 = vmatprep.subr.bf16.mxu1 %v604_v0  ;;  %461 = vmatprep.mubr.msk.f32.mxu1 %vm605_vm0, %v606_v1  ;;  %v607_v3 = vmov 1966171168   ;;  %v156_v8 = vld [vmem:[#allocation7 + $0x8] sm:$0xff]  ;;  %v157_v9 = vld [vmem:[#allocation7 + $0x10] sm:$0xff]  ;;  %v158_v11 = vld [vmem:[#allocation7 + $0x18] sm:$0xff]  ;;  %vm73_vm1 = vcmask 261120  }
  0x38   :  { %v170_v4 = vunpack.c.l.s4 %v607_v3  ;;  %v699_v6 = vshrl.u32 %v172_v2, 7  ;;  %v473_v10 = vpack.c.bf16 %v156_v8, %v155_v7  ;;  %v69_v12 = vld [vmem:[#allocation5] sm:$0xff]  ;;  %v70_v13 = vld [vmem:[#allocation5 + $0x8] sm:$0xff]  ;;  %v67_v16 = vld [vmem:[%s749_s1] sm:$0x1]  ;;  %v476_v19 = vpack.c.bf16 %v158_v11, %v157_v9 }
  0x39   :  { %v464_v15 = vpack.c.bf16 %v70_v13, %v69_v12  ;;  %v68_v17 = vld [vmem:[%s749_s1 + $0x1] sm:$0x1]  ;;  %v72_v21 = vld [vmem:[#allocation5 + $0x18] sm:$0xff]  ;;  %v428_v27 = vld [vmem:[%s752_s4] ss:$0 sm:$0xff]  ;;  %v310_v49 = vand.u32 127, %v172_v2 }
  0x3a   :  { %v171_v5 = vunpack.c.0.s8 %v170_v4  ;;  %v71_v18 = vld [vmem:[#allocation5 + $0x10] sm:$0xff]  ;;  %474 = vmatpush3.bf16.msra.mxu1 %v473_v10  ;;  %v168_v20 = vcombine.low %v67_v16, %v68_v17  ;;  %v712_v26 = vld [vmem:[#allocation2 + $0x8] sm:$0xff]  ;;  %v280_v33 = vsub.s32 0, %v699_v6  ;;  %vm319_vm2 = vcmask 1041409   ;;  %s609_s4 = smov [#allocation8]  }
  0x3b   :  { %v708_v22 = vld [vmem:[#allocation2] sm:$0xff]  ;;  %475 = vmatprep.subr.bf16.mxu1 %v604_v0  ;;  %465 = vmatprep.subr.bf16.mxu0 %v464_v15  ;;  %v468_v23 = vpack.c.bf16 %v72_v21, %v71_v18  ;;  %v313_v51 = vsub.s32 %v310_v49, %v699_v6  ;;  %vm322_vm3 = vcmask 58368   ;;  %v608_v57 = vmov 0  }
  0x3c   :  { %v174_v14 = vsub.s32 %v171_v5, %v699_v6  ;;  %467 = vmatpush3.bf16.msra.mxu0 %v464_v15  ;;  %450 = vmatprep.mubr.msk.f32.mxu0 %vm73_vm1, %v708_v22  ;;  %v430_v42 = vld [vmem:[%s753_s5] ss:$0 sm:$0xff]  ;;  %v333_v58 = vsub.s32 1, %v699_v6  ;;  %vm405_vm4 = vcmask 253952   ;;  %s413_s5 = sshll.u32 %s609_s4, 4  ;;  %s414_s5 = int_to_ptr.vmem [resolvable:$true] %s413_s5 }
  0x3d   :  { %469 = vmatprep.subr.bf16.mxu0 %v468_v23  ;;  %492 = vset.pattern.permute.xlu0 %v608_v57  ;;  %s571_s15 = scalar_lea.vmem %s414_s5, 32  ;;  %p576_p11 = scmp.lt.s32.totalorder %s414_s5, %s414_s5 }
  0x3e   :  { %v175_v24 = vrot.slane %v168_v20, %v174_v14  ;;  %477 = vmatpush3.bf16.msra.mxu1 %v476_v19  ;;  %491 = vset.pattern.permute.xlu1 %v608_v57  ;;  %p572_p10 = scmp.ne.s32.totalorder %s414_s5, %s571_s15  ;;  %p577_p12 = scmp.lt.s32.totalorder %s571_s15, %s571_s15 }
  0x40   :  { %v182_v25 = vrot.slane %v175_v24, %v174_v14  ;;  %471 = vmatpush3.bf16.msra.mxu0 %v468_v23  ;;  %p578_p13 = por %p577_p12, %p576_p11 }
  0x42   :  { %462 = vmatmul.mubr.msk.f32.vlgmr.msra.gmra.mrb[0].mxu1 %vm73_vm1, %v182_v25  ;;  %p579_p0 = pnand %p578_p13, %p572_p10 }
  0x43   :  { %451 = vmatmul.mubr.msk.f32.vlgmr.msra.gmra.mrb[0].mxu0 %vm73_vm1, %v712_v26 }
 0x115   :  { %v251_v28 = vpop.f32.mrb[0].mxu1 }
 0x116   :  { %v252_v29 = vadd.f32 %v428_v27, %v251_v28  ;;  %v463_v30 = vpop.f32.mrb[1].mxu1  ;;  %v452_v31 = vpop.f32.mrb[0].mxu0 }
 0x117   :  { %v146_v34 = vpop.f32.mrb[1].mxu0 }
 0x118   :  { %v262_v32 = vrot.slane %v252_v29, %v174_v14 }
 0x11a   :  { %v263_v35 = vcombine.high %v262_v32, %v262_v32  ;;  %v270_v36 = vrot.slane %v262_v32, %v174_v14 }
 0x11c   :  { %v277_v37 = vrot.slane %v263_v35, %v174_v14  ;;  %v281_v38 = vrot.slane %v270_v36, %v280_v33 }
 0x11e   :  { %v285_v39 = vrot.slane %v277_v37, %v280_v33  ;;  %v288_v40 = vadd.f32 %v281_v38, %v146_v34 }
 0x120   :  { %v289_v41 = vadd.f32 %v452_v31, %v285_v39  ;;  %493 = vtanh.f32 %v288_v40 }
 0x122   :  { %495 = vtanh.f32 %v289_v41 }
 0x12a   :  { %v494_v43 = vpop.eup %493 }
 0x12b   :  { %v299_v44 = vmul.f32 %v494_v43, %v430_v42 }
 0x12c   :  { %v496_v45 = vpop.eup %495 }
 0x12d   :  { %v301_v46 = vsel %vm73_vm1, %v299_v44, 0.0  ;;  %v300_v47 = vmul.f32 %v496_v45, %v430_v42 }
 0x12e   :  { %302 = vadd.xlane.f32.xlu0 %v301_v46 }
 0x12f   :  { %v304_v48 = vsel %vm73_vm1, %v300_v47, 0.0 }
 0x132   :  { %305 = vadd.xlane.f32.xlu0 %v304_v48 }
 0x1bb   :  { %v303_v50 = vpop.xlane.xlu0 %302 }
 0x1bc   :  { %v314_v53 = vrot.slane %v303_v50, %v313_v51 }
 0x1bf   :  { %v306_v52 = vpop.xlane.xlu0 %305 }
 0x1c0   :  { %v318_v54 = vrot.slane %v306_v52, %v313_v51 }
 0x1c2   :  { %v320_v55 = vsel %vm319_vm2, %v318_v54, %v314_v53 }
 0x1c3   :  { %v323_v56 = vsel %vm322_vm3, %v320_v55, -inf }
 0x1c4   :  { %324 = vmax.xlane.f32.xlu1 %v323_v56 }
 0x251   :  { %v325_v59 = vpop.xlane.xlu1 %324 }
 0x252   :  { %v330_v60 = vrot.slane %v325_v59, %v280_v33  ;;  %v334_v61 = vrot.slane %v325_v59, %v333_v58 }
 0x254   :  { %v337_v62 = vsub.f32 %v303_v50, %v330_v60  ;;  %v338_v63 = vsub.f32 %v306_v52, %v334_v61 }
 0x256   :  { %v339_v0 = vmul.f32 1.442695, %v337_v62  ;;  %v341_v1 = vmul.f32 1.442695, %v338_v63 }
 0x258   :  { %497 = vpow2.f32 %v339_v0 }
 0x259   :  { %499 = vpow2.f32 %v341_v1 }
 0x262   :  { %v498_v2 = vpop.eup %497 }
 0x263   :  { %v500_v3 = vpop.eup %499  ;;  %346 = vperm.xlu1 %491, %v498_v2  }
 0x264   :  { %349 = vperm.xlu0 %492, %v500_v3  }
 0x2e2   :  { %v347_v4 = vpop.permute.xlu1 %346 }
 0x2e3   :  { %v350_v5 = vpop.permute.xlu0 %349  ;;  %v354_v7 = vrot.slane %v347_v4, %v313_v51 }
 0x2e4   :  { %v358_v8 = vrot.slane %v350_v5, %v313_v51 }
 0x2e6   :  { %v359_v9 = vsel %vm319_vm2, %v358_v8, %v354_v7 }
 0x2e7   :  { %v361_v6 = vsel %vm322_vm3, %v359_v9, 0.0 }
 0x2e8   :  { %362 = vadd.xlane.f32.xlu1 %v361_v6 }
 0x375   :  { %v363_v10 = vpop.xlane.xlu1 %362 }
 0x376   :  { %v368_v11 = vrot.slane %v363_v10, %v280_v33  ;;  %v372_v12 = vrot.slane %v363_v10, %v333_v58 }
 0x378   :  { %501 = vrcp.f32 %v368_v11 }
 0x379   :  { %503 = vrcp.f32 %v372_v12 }
 0x382   :  { %v502_v13 = vpop.eup %501 }
 0x383   :  { %v376_v14 = vmul.f32 %v502_v13, %v498_v2  ;;  %v504_v15 = vpop.eup %503 }
 0x384   :  { %v378_v16 = vmul.f32 %v504_v15, %v500_v3 }
 0x385   :  { %381 = vperm.xlu0 %492, %v376_v14  }
 0x389   :  { %386 = vperm.xlu0 %492, %v378_v16  }
 0x404   :  { %v382_v17 = vpop.permute.xlu0 %381 }
 0x405   :  { %v389_v18 = vmul.f32 %v382_v17, %v708_v22 }
 0x407   :  { %v391_v19 = vsel %vm73_vm1, %v389_v18, 0.0 }
 0x408   :  { %v392_v20 = vrot.slane %v391_v19, 4  ;;  %v387_v21 = vpop.permute.xlu0 %386 }
 0x409   :  { %v390_v23 = vmul.f32 %v387_v21, %v712_v26 }
 0x40a   :  { %v393_v24 = vadd.f32 %v392_v20, %v391_v19 }
 0x40b   :  { %v398_v25 = vsel %vm73_vm1, %v390_v23, 0.0 }
 0x40c   :  { %v394_v27 = vrot.slane %v393_v24, 2  ;;  %v399_v28 = vrot.slane %v398_v25, 4 }
 0x40e   :  { %v395_v29 = vadd.f32 %v394_v27, %v393_v24  ;;  %v400_v30 = vadd.f32 %v399_v28, %v398_v25 }
 0x410   :  { %v396_v31 = vrot.slane %v395_v29, 1  ;;  %v401_v32 = vrot.slane %v400_v30, 2 }
 0x412   :  { %v397_v33 = vadd.f32 %v396_v31, %v395_v29  ;;  %v402_v34 = vadd.f32 %v401_v32, %v400_v30 }
 0x414   :  { %v403_v22 = vrot.slane %v402_v34, 1  ;;  %406 = vst.msk [vmem:[#allocation8] sm:$0x1] %vm405_vm4, %v397_v33 }
 0x416   :  { %v404_v35 = vadd.f32 %v403_v22, %v402_v34 }
 0x418   :  { %407 = vst.msk [vmem:[#allocation8 + $0x1] sm:$0x1] %vm405_vm4, %v404_v35 }
 0x419   :  { %582 = shalt.err (!%p579_p0)
}
 0x41a   :  { %s583_s18 = scalar_lea.hbm %s754_s6, 32 }
 0x41b   :  { %p584_p1 = scmp.ne.s32.totalorder %s754_s6, %s583_s18  ;;  %p587_p2 = scmp.lt.u32.totalorder %s583_s18, %s754_s6 }
 0x41d   :  { %p589_p3 = pnand %p587_p2, %p584_p1 }
 0x41f   :  { %592 = shalt.err (!%p589_p3)
}
 0x420   :  { %s610_s22 = smov 16   ;;  %s611_s23 = smov 1  }
 0x421   :  { %419 = dma.vmem_to_hbm [thread:$0]  %s414_s5, 32, %s754_s6, [#allocation4], %s610_s22, %s610_s22, %s611_s23  }
 0x422   :  { %597 = dma.done.wait [#allocation4], 32  }
 0x423   :  { %598 = vsyncadd [#allocation4], 4294967264 }
 0x424   :  { %423 = vsyncpa [#allocation3], 1 }
 0x425   :  { %424 = vsyncpa [#allocation6], 1 }
 0x426   :  { %425 = vsyncpa [#allocation4], 1 }

</bundles_post_ra>
